<compile_context>
chip_gen: v7x
topology: tpu7x:2x2x1
jax: 0.10.0
libtpu: 0.0.40
codegen_flags: <defaults>
</compile_context>

<pallas_src>
import jax
import jax.numpy as jnp
from jax.experimental import pallas as pl
from jax.experimental.pallas import tpu as pltpu

BN_EPS = 1e-5


# --------------------------------------------------------------------------
# helpers: generation-aware padding / tiling / VMEM budgeting
# --------------------------------------------------------------------------
def _round_up(x, m):
    return (x + m - 1) // m * m


def _tpu_generation():
    """Returns (vmem_ceiling_bytes, n_mult) for the current TPU generation."""
    vmem_cap = 128 * 1024 * 1024
    try:
        vmem_cap = int(pltpu.get_tpu_info().vmem_capacity_bytes)
    except Exception:
        pass
    kind = ""
    try:
        kind = jax.devices()[0].device_kind.lower()
    except Exception:
        pass
    # v6e / v7x MXUs are 256x256; v5e (and older) are 128x128.
    n_mult = 256 if ("v6" in kind or "v7" in kind or "7x" in kind) else 128
    # Leave headroom for compiler-internal scratch: ~5/8 of physical VMEM
    # (v7x: 64 MiB -> 40 MiB; v5e/v6e: 128 MiB -> 80 MiB).
    return (vmem_cap * 5) // 8, n_mult


def _pad_dim(d, n_mult):
    # Lane-dense padding; only use the 256-wide MXU alignment once the dim
    # actually spans multiple 128-lane tiles (don't inflate tiny demo dims).
    return 128 if d <= 128 else _round_up(d, n_mult)


def _pick_out_tile(dim, target, mult):
    """Largest multiple of `mult` dividing `dim` that is <= target."""
    t = max((min(dim, target) // mult) * mult, mult)
    while dim % t:
        t -= mult
    return t


def _pick_contract_tile(total, bytes_per_k, budget, max_tile=2048):
    """Largest multiple-of-128 tile dividing `total` (itself a multiple of 128)
    whose double-buffered input streams fit `budget` bytes."""
    t = max((min(total, max_tile) // 128) * 128, 128)
    while t > 128:
        if total % t == 0 and 2 * t * bytes_per_k <= budget:
            return t
        t -= 128
    return 128


def _vmem_limit(need_bytes, ceiling):
    want = max(int(need_bytes * 1.25) + (2 << 20), 16 << 20)
    return int(min(ceiling, want))


# --------------------------------------------------------------------------
# backbone kernel: representation = xf @ wb + bb   (hooked Linear(IN, D))
# --------------------------------------------------------------------------
def _backbone_kernel(xf_ref, wb_ref, bb_ref, rep_ref):
    k = pl.program_id(1)

    # Initialize the resident f32 output block with the bias on the first K
    # step (no separate accumulator scratch, no final copy).
    @pl.when(k == 0)
    def _():
        rep_ref[...] = jnp.zeros_like(rep_ref) + bb_ref[...]

    rep_ref[...] += jnp.dot(xf_ref[...], wb_ref[...],
                            preferred_element_type=jnp.float32)


def _backbone_call(xf_p, wb_p, bb_p, *, tn, tk, vmem_ceiling):
    B, IN_p = xf_p.shape
    D_p = wb_p.shape[1]
    nj, nk = D_p // tn, IN_p // tk
    Bp = max(B, 8)  # sublane padding for VMEM sizing

    vmem_need = (2 * (B * tk * 2)          # xf tiles (bf16, double-buffered)
                 + 2 * (tk * tn * 2)       # wb tiles (bf16, double-buffered)
                 + 2 * (8 * tn * 4)        # bias block (f32)
                 + 2 * (Bp * tn * 4))      # resident output block (f32)
    cost = pl.CostEstimate(
        flops=2 * B * IN_p * D_p,
        transcendentals=0,
        bytes_accessed=(2 * B * IN_p * nj + 2 * IN_p * D_p
                        + 4 * D_p + 4 * B * D_p))

    grid_spec = pltpu.PrefetchScalarGridSpec(
        num_scalar_prefetch=0,
        grid=(nj, nk),  # reduction axis last
        in_specs=[
            pl.BlockSpec((B, tk), lambda j, k: (0, k)),    # xf   (K-tiled)
            pl.BlockSpec((tk, tn), lambda j, k: (k, j)),   # wb   (K x N tiled)
            pl.BlockSpec((1, tn), lambda j, k: (0, j)),    # bias (per N tile)
        ],
        out_specs=pl.BlockSpec((B, tn), lambda j, k: (0, j)),
    )
    return pl.pallas_call(
        _backbone_kernel,
        out_shape=jax.ShapeDtypeStruct((B, D_p), jnp.float32),
        grid_spec=grid_spec,
        compiler_params=pltpu.CompilerParams(
            # v7x: two TensorCores split the D (output-column) axis.
            dimension_semantics=("parallel", "arbitrary"),
            vmem_limit_bytes=_vmem_limit(vmem_need, vmem_ceiling)),
        cost_estimate=cost,
    )(xf_p, wb_p, bb_p)


# --------------------------------------------------------------------------
# projector kernel: Linear(D,H)+b1 -> BatchNorm1d(H) -> ReLU -> Linear(H,P)+b2
# --------------------------------------------------------------------------
def _projector_kernel(rep_ref, w1_ref, bnp_ref, w2_hbm_ref, b2_ref,
                      proj_ref, z_ref, w2_vmem, w2_sem):
    d = pl.program_id(0)

    @pl.when(d == 0)
    def _():
        z_ref[...] = jnp.zeros_like(z_ref)
        # Single-buffered w2: one DMA, started up front, overlapped with the
        # whole D-contraction loop.
        pltpu.make_async_copy(w2_hbm_ref, w2_vmem, w2_sem).start()

    # K-tiled h @ w1 (bf16 operands, f32 accumulation in VMEM scratch).
    z_ref[...] += jnp.dot(rep_ref[...].astype(jnp.bfloat16), w1_ref[...],
                          preferred_element_type=jnp.float32)

    @pl.when(d == pl.num_programs(0) - 1)
    def _():
        pltpu.make_async_copy(w2_hbm_ref, w2_vmem, w2_sem).wait()

        # Linear(D, H) bias
        z = z_ref[...] + bnp_ref[0:1, :]

        # BatchNorm1d(H), training mode: batch stats, biased variance,
        # two-pass (centered) for numerical robustness.
        inv_n = 1.0 / z.shape[0]
        mean = jnp.sum(z, axis=0, keepdims=True) * inv_n
        zc = z - mean
        var = jnp.sum(zc * zc, axis=0, keepdims=True) * inv_n
        zn = zc * jax.lax.rsqrt(var + BN_EPS) * bnp_ref[1:2, :] + bnp_ref[2:3, :]

        # ReLU
        a = jnp.maximum(zn, 0.0)

        # Linear(H, P) + bias
        proj_ref[...] = jnp.dot(a.astype(jnp.bfloat16), w2_vmem[...],
                                preferred_element_type=jnp.float32) + b2_ref[...]


def _projector_call(rep_p, w1_p, bnp_p, w2_p, b2_p, *, td, vmem_ceiling):
    B, D_p = rep_p.shape
    H_p = w1_p.shape[1]
    P_p = w2_p.shape[1]
    nd = D_p // td
    Bp = max(B, 8)

    vmem_need = (2 * (B * td * 4)        # representation tiles (f32)
                 + 2 * (td * H_p * 2)    # w1 tiles (bf16, double-buffered)
                 + 2 * (8 * H_p * 4)     # [b1; gamma; beta]
                 + 2 * (8 * P_p * 4)     # b2
                 + H_p * P_p * 2         # w2 (single-buffered VMEM landing)
                 + Bp * H_p * 4          # z accumulator
                 + 2 * (Bp * P_p * 4))   # output
    cost = pl.CostEstimate(
        flops=2 * B * (D_p * H_p + H_p * P_p),
        transcendentals=H_p,
        bytes_accessed=(4 * B * D_p + 2 * D_p * H_p + 4 * 3 * H_p
                        + 2 * H_p * P_p + 4 * P_p + 4 * B * P_p))

    grid_spec = pltpu.PrefetchScalarGridSpec(
        num_scalar_prefetch=0,
        grid=(nd,),
        in_specs=[
            pl.BlockSpec((B, td), lambda d: (0, d)),    # representation (K-tiled)
            pl.BlockSpec((td, H_p), lambda d: (d, 0)),  # w1 (K-tiled stream)
            pl.BlockSpec((3, H_p), lambda d: (0, 0)),   # merged [b1; gamma; beta]
            pl.BlockSpec(memory_space=pl.ANY),          # w2: manual single-copy DMA
            pl.BlockSpec((1, P_p), lambda d: (0, 0)),   # b2
        ],
        out_specs=pl.BlockSpec((B, P_p), lambda d: (0, 0)),
        scratch_shapes=[
            pltpu.VMEM((B, H_p), jnp.float32),          # z accumulator
            pltpu.VMEM((H_p, P_p), jnp.bfloat16),       # w2 landing buffer
            pltpu.SemaphoreType.DMA,                    # w2 copy semaphore
        ],
    )
    return pl.pallas_call(
        _projector_kernel,
        out_shape=jax.ShapeDtypeStruct((B, P_p), jnp.float32),
        grid_spec=grid_spec,
        compiler_params=pltpu.CompilerParams(
            dimension_semantics=("arbitrary",),
            vmem_limit_bytes=_vmem_limit(vmem_need, vmem_ceiling)),
        cost_estimate=cost,
    )(rep_p, w1_p, bnp_p, w2_p, b2_p)


# --------------------------------------------------------------------------
# wrapper
# --------------------------------------------------------------------------
def netwrapper_forward(x, params):
    """x: [B, C, H, W] float32. Returns (projection [B, P], representation [B, D])."""
    wb, bb, w1, b1, gamma, beta, w2, b2 = params
    B = x.shape[0]
    xf = x.reshape(B, -1).astype(jnp.float32)       # Flatten glue (plain JAX)

    IN, D = wb.shape
    H = w1.shape[1]
    P = w2.shape[1]

    vmem_ceiling, n_mult = _tpu_generation()
    D_p = _pad_dim(D, n_mult)
    H_p = _pad_dim(H, n_mult)
    P_p = _pad_dim(P, n_mult)
    IN_p = _round_up(IN, 128)

    # ---- tiling derived from the per-generation VMEM budget ----
    tn_mult = n_mult if D_p % n_mult == 0 else 128
    tn = _pick_out_tile(D_p, 512, tn_mult)                       # backbone N tile
    tk = _pick_contract_tile(IN_p, B * 2 + tn * 2,               # backbone K tile
                             vmem_ceiling // 2)
    td = _pick_contract_tile(D_p, B * 4 + H_p * 2,               # projector K tile
                             max(vmem_ceiling // 2 - H_p * P_p * 2, 2 << 20))

    # ---- zero-padded, lane-dense operands (bf16 for MXU inputs) ----
    xf_p = jnp.zeros((B, IN_p), jnp.bfloat16).at[:, :IN].set(xf.astype(jnp.bfloat16))
    wb_p = jnp.zeros((IN_p, D_p), jnp.bfloat16).at[:IN, :D].set(wb.astype(jnp.bfloat16))
    bb_p = jnp.zeros((1, D_p), jnp.float32).at[:, :D].set(bb)
    w1_p = jnp.zeros((D_p, H_p), jnp.bfloat16).at[:D, :H].set(w1.astype(jnp.bfloat16))
    bnp_p = (jnp.zeros((3, H_p), jnp.float32)
             .at[0, :H].set(b1[0]).at[1, :H].set(gamma[0]).at[2, :H].set(beta[0]))
    w2_p = jnp.zeros((H_p, P_p), jnp.bfloat16).at[:H, :P].set(w2.astype(jnp.bfloat16))
    b2_p = jnp.zeros((1, P_p), jnp.float32).at[:, :P].set(b2)

    rep_p = _backbone_call(xf_p, wb_p, bb_p, tn=tn, tk=tk, vmem_ceiling=vmem_ceiling)
    proj_p = _projector_call(rep_p, w1_p, bnp_p, w2_p, b2_p,
                             td=td, vmem_ceiling=vmem_ceiling)

    # slice the lane-dense padded outputs back to module dims
    return proj_p[:, :P], rep_p[:, :D]


# --------------------------------------------------------------------------
# deterministic synthetic parameters + pure-JAX reference
# --------------------------------------------------------------------------
def init_params(key, in_dim, feat_dim, hidden_size, projection_size):
    """PyTorch-style fan-in-scaled parameters, stored f32."""
    k = jax.random.split(key, 6)

    def lin(kw, kb, fan_in, fan_out):
        bound = 1.0 / jnp.sqrt(fan_in)
        w = jax.random.uniform(kw, (fan_in, fan_out), jnp.float32, -bound, bound)
        b = jax.random.uniform(kb, (1, fan_out), jnp.float32, -bound, bound)
        return w, b

    wb, bb = lin(k[0], k[1], in_dim, feat_dim)               # hooked backbone Linear
    w1, b1 = lin(k[2], k[3], feat_dim, hidden_size)          # projector Linear 1
    w2, b2 = lin(k[4], k[5], hidden_size, projection_size)   # projector Linear 2
    gamma = jnp.ones((1, hidden_size), jnp.float32)          # BatchNorm1d affine
    beta = jnp.zeros((1, hidden_size), jnp.float32)
    return (wb, bb, w1, b1, gamma, beta, w2, b2)


def _reference(x, params):
    """Pure-JAX reference mirroring the kernel's bf16-MXU / f32-accumulate math."""
    wb, bb, w1, b1, gamma, beta, w2, b2 = params
    xf = x.reshape(x.shape[0], -1)
    h = jnp.dot(xf.astype(jnp.bfloat16), wb.astype(jnp.bfloat16),
                preferred_element_type=jnp.float32) + bb
    z = jnp.dot(h.astype(jnp.bfloat16), w1.astype(jnp.bfloat16),
                preferred_element_type=jnp.float32) + b1
    mean = jnp.mean(z, axis=0, keepdims=True)
    var = jnp.mean((z - mean) ** 2, axis=0, keepdims=True)
    zn = (z - mean) / jnp.sqrt(var + BN_EPS) * gamma + beta
    a = jnp.maximum(zn, 0.0)
    proj = jnp.dot(a.astype(jnp.bfloat16), w2.astype(jnp.bfloat16),
                   preferred_element_type=jnp.float32) + b2
    return proj, h


if __name__ == "__main__":
    # Small shapes: batch=2, channels=4, spatial=16x16 -> in_dim = 4*16*16 = 1024
    B, C, H, W = 2, 4, 16, 16
    IN = C * H * W
    FEAT_DIM = 32              # hooked backbone layer width (= representation dim)
    PROJECTION_HIDDEN = 32     # projector hidden size
    PROJECTION_SIZE = 16       # projector output size

    key = jax.random.PRNGKey(0)
    kx, kp = jax.random.split(key)
    x = jax.random.normal(kx, (B, C, H, W), dtype=jnp.float32)
    params = init_params(kp, IN, FEAT_DIM, PROJECTION_HIDDEN, PROJECTION_SIZE)

    projection, representation = netwrapper_forward(x, params)
    jax.block_until_ready((projection, representation))

    proj_ref, rep_ref = _reference(x, params)
    assert projection.shape == (B, PROJECTION_SIZE)
    assert representation.shape == (B, FEAT_DIM)
    assert jnp.allclose(representation, rep_ref, atol=2e-3, rtol=2e-3)
    assert jnp.allclose(projection, proj_ref, atol=2e-3, rtol=2e-3)

    print("KERNEL_OK")
</pallas_src>

<mosaic_0001>
module attributes {stable_mosaic.version = 11 : i64} {
  func.func @_backbone_kernel(%arg0: i32, %arg1: i32, %arg2: memref<2x1024xbf16, #tpu.memory_space<vmem>>, %arg3: memref<1024x128xbf16, #tpu.memory_space<vmem>>, %arg4: memref<1x128xf32, #tpu.memory_space<vmem>>, %arg5: memref<2x128xf32, #tpu.memory_space<vmem>>) attributes {dimension_semantics = [#tpu.dimension_semantics<parallel>, #tpu.dimension_semantics<arbitrary>], iteration_bounds = array<i64: 1, 1>, scalar_prefetch = 0 : i64, scratch_operands = 0 : i64, tpu.core_type = #tpu.core_type<tc>, window_params = [{transform_indices = @transform_0, window_bounds = array<i64: 2, 1024>}, {transform_indices = @transform_1, window_bounds = array<i64: 1024, 128>}, {transform_indices = @transform_2, window_bounds = array<i64: 1, 128>}, {transform_indices = @transform_3, window_bounds = array<i64: 2, 128>}]} {
    %c0_i32 = arith.constant 0 : i32
    %0 = arith.cmpi eq, %arg1, %c0_i32 : i32
    %1 = arith.extui %0 : i1 to i32
    %c0_i32_0 = arith.constant 0 : i32
    %2 = arith.cmpi ne, %1, %c0_i32_0 : i32
    scf.if %2 {
      %cst_8 = arith.constant 0.000000e+00 : f32
      %9 = vector.broadcast %cst_8 : f32 to vector<2x128xf32>
      %c0_9 = arith.constant 0 : index
      %c0_10 = arith.constant 0 : index
      %10 = vector.load %arg4[%c0_9, %c0_10] : memref<1x128xf32, #tpu.memory_space<vmem>>, vector<1x128xf32>
      %11 = vector.broadcast %10 : vector<1x128xf32> to vector<2x128xf32>
      %12 = arith.addf %9, %11 : vector<2x128xf32>
      %c0_11 = arith.constant 0 : index
      %c0_12 = arith.constant 0 : index
      %13 = vector.load %arg5[%c0_11, %c0_12] : memref<2x128xf32, #tpu.memory_space<vmem>>, vector<2x128xf32>
      tpu.vector_store %arg5[%c0_11, %c0_12], %12 {strides = array<i32>} : memref<2x128xf32, #tpu.memory_space<vmem>>, vector<2x128xf32>,
    } else {
    }
    %c0 = arith.constant 0 : index
    %c0_1 = arith.constant 0 : index
    %3 = vector.load %arg5[%c0, %c0_1] : memref<2x128xf32, #tpu.memory_space<vmem>>, vector<2x128xf32>
    %c0_2 = arith.constant 0 : index
    %c0_3 = arith.constant 0 : index
    %4 = vector.load %arg2[%c0_2, %c0_3] : memref<2x1024xbf16, #tpu.memory_space<vmem>>, vector<2x1024xbf16>
    %c0_4 = arith.constant 0 : index
    %c0_5 = arith.constant 0 : index
    %5 = vector.load %arg3[%c0_4, %c0_5] : memref<1024x128xbf16, #tpu.memory_space<vmem>>, vector<1024x128xbf16>
    %cst = arith.constant dense<0.000000e+00> : vector<2x128xf32>
    %6 = tpu.matmul %4, %5, %cst {dimension_numbers = #tpu.dot_dimension_numbers<[1], [0], [0], [1], [0, 0, 1, 1], [], []>} : vector<2x1024xbf16>, vector<1024x128xbf16>, vector<2x128xf32> -> vector<2x128xf32>
    %7 = arith.addf %3, %6 : vector<2x128xf32>
    %c0_6 = arith.constant 0 : index
    %c0_7 = arith.constant 0 : index
    %8 = vector.load %arg5[%c0_6, %c0_7] : memref<2x128xf32, #tpu.memory_space<vmem>>, vector<2x128xf32>
    tpu.vector_store %arg5[%c0_6, %c0_7], %7 {strides = array<i32>} : memref<2x128xf32, #tpu.memory_space<vmem>>, vector<2x128xf32>,
    return
  }
  func.func @transform_0(%arg0: i32, %arg1: i32) -> (i32, i32) {
    %c0_i32 = arith.constant 0 : i32
    %c0_i32_0 = arith.constant 0 : i32
    return %c0_i32, %arg1 : i32, i32
  }
  func.func @transform_1(%arg0: i32, %arg1: i32) -> (i32, i32) {
    %c0_i32 = arith.constant 0 : i32
    return %arg1, %arg0 : i32, i32
  }
  func.func @transform_2(%arg0: i32, %arg1: i32) -> (i32, i32) {
    %c0_i32 = arith.constant 0 : i32
    %c0_i32_0 = arith.constant 0 : i32
    return %c0_i32, %arg0 : i32, i32
  }
  func.func @transform_3(%arg0: i32, %arg1: i32) -> (i32, i32) {
    %c0_i32 = arith.constant 0 : i32
    %c0_i32_0 = arith.constant 0 : i32
    return %c0_i32, %arg0 : i32, i32
  }
}

</mosaic_0001>

<bundles_post_ra>
// kernel: tpu_custom_call.1
= control target key start
LH: loop header
LB: loop body
LE: loop exit
PB: predicated region body
PF: predicated region fallthrough
CT: control target
= control target key end

     0   :  { %8 = vsyncpa [#allocation3], 0  ;;  %s1186_s0 = inlined_call_operand.hbm [shape: bf16[2,1024], index: 0, kind: input, shape index: {}]   ;;  %s1187_s1 = inlined_call_operand.hbm [shape: bf16[1024,128], index: 1, kind: input, shape index: {}]   ;;  %s1188_s2 = inlined_call_operand.vmem [shape: f32[1,128], index: 2, kind: input, shape index: {}]   ;;  %s1189_s3 = inlined_call_operand.hbm [shape: f32[2,128], index: 3, kind: output, shape index: {}]  }
   0x1   :  { %9 = vsyncpa [#allocation6], 0 }
   0x2   :  { %10 = vsyncpa [#allocation4], 0  ;;  %s1101_s12 = smov [#allocation2]   ;;  %s1102_s14 = smov [#allocation5]  }
   0x3   :  { %s17_s13 = sshll.u32 %s1101_s12, 4  ;;  %s26_s15 = sshll.u32 %s1102_s14, 4  ;;  %s18_s13 = int_to_ptr.vmem [resolvable:$true] %s17_s13  ;;  %s1127_s15 = int_to_ptr.vmem [resolvable:$true] %s26_s15 }
   0x4   :  { %s1029_s18 = scalar_lea.hbm %s1186_s0, 128 }
   0x5   :  { %p1030_p0 = scmp.ne.s32.totalorder %s1186_s0, %s1029_s18  ;;  %p1033_p1 = scmp.lt.u32.totalorder %s1029_s18, %s1186_s0 }
   0x7   :  { %p1035_p2 = pnand %p1033_p1, %p1030_p0 }
   0x9   :  { %1038 = shalt.err (!%p1035_p2)
}
   0xa   :  { %s1039_s23 = scalar_lea.vmem %s18_s13, 128  ;;  %p1044_p4 = scmp.lt.s32.totalorder %s18_s13, %s18_s13 }
   0xb   :  { %p1040_p3 = scmp.ne.s32.totalorder %s18_s13, %s1039_s23  ;;  %p1045_p5 = scmp.lt.s32.totalorder %s1039_s23, %s1039_s23 }
   0xd   :  { %p1046_p6 = por %p1045_p5, %p1044_p4 }
   0xf   :  { %p1047_p7 = pnand %p1046_p6, %p1040_p3 }
  0x11   :  { %1050 = shalt.err (!%p1047_p7)
}
  0x12   :  { %20 = dma.hbm_to_vmem [thread:$0]  %s1186_s0, 128, %s18_s13, [#allocation3]  }
  0x13   :  { %s1051_s28 = scalar_lea.hbm %s1187_s1, 8192 }
  0x14   :  { %p1052_p8 = scmp.ne.s32.totalorder %s1187_s1, %s1051_s28  ;;  %p1055_p9 = scmp.lt.u32.totalorder %s1051_s28, %s1187_s1 }
  0x16   :  { %p1057_p10 = pnand %p1055_p9, %p1052_p8 }
  0x18   :  { %1060 = shalt.err (!%p1057_p10)
}
  0x19   :  { %s1061_s6 = scalar_lea.vmem %s1127_s15, 8192  ;;  %p1066_p12 = scmp.lt.s32.totalorder %s1127_s15, %s1127_s15 }
  0x1a   :  { %p1062_p11 = scmp.ne.s32.totalorder %s1127_s15, %s1061_s6  ;;  %p1067_p13 = scmp.lt.s32.totalorder %s1061_s6, %s1061_s6 }
  0x1c   :  { %p1068_p0 = por %p1067_p13, %p1066_p12 }
  0x1e   :  { %p1069_p1 = pnand %p1068_p0, %p1062_p11 }
  0x20   :  { %1072 = shalt.err (!%p1069_p1)
}
  0x21   :  { %s1103_s0 = smov 64   ;;  %s1104_s7 = smov 4  }
  0x22   :  { %32 = dma.hbm_to_vmem [thread:$0]  %s1187_s1, 8192, %s1127_s15, [#allocation6], %s1103_s0, %s1103_s0, %s1104_s7  }
  0x23   :  { %1095 = dma.done.wait [#allocation3], 128  }
  0x24   :  { %1096 = vsyncadd [#allocation3], 4294967168 }
  0x25   :  { %1097 = dma.done.wait [#allocation6], 8192  }
  0x26   :  { %1098 = vsyncadd [#allocation6], 4294959104  ;;  %v964_v0 = vld [vmem:[#allocation5 + $0x40] sm:$0xff]   ;;  %v968_v4 = vld [vmem:[#allocation5 + $0x48] sm:$0xff]   ;;  %v1105_v22 = vmov 1966171168   ;;  %v190_v24 = vlaneseq }
  0x27   :  { %v965_v1 = vld [vmem:[#allocation5 + $0xc0] sm:$0xff]   ;;  %870 = vmatprep.subr.bf16.mxu0 %v964_v0  ;;  %v969_v5 = vld [vmem:[#allocation5 + $0xc8] sm:$0xff]   ;;  %v972_v8 = vld [vmem:[#allocation5 + $0x50] sm:$0xff]   ;;  %v188_v23 = vunpack.c.l.s4 %v1105_v22 }
  0x28   :  { %v966_v2 = vld [vmem:[#allocation5] sm:$0xff]   ;;  %892 = vmatprep.subr.bf16.mxu1 %v965_v1  ;;  %v970_v6 = vld [vmem:[#allocation5 + $0x8] sm:$0xff]   ;;  %v973_v9 = vld [vmem:[#allocation5 + $0xd0] sm:$0xff]   ;;  %v191_v30 = vshrl.u32 %v190_v24, 7 }
  0x29   :  { %v967_v3 = vld [vmem:[#allocation5 + $0x80] sm:$0xff]   ;;  %871 = vmatpush3.bf16.msra.mxu0 %v966_v2  ;;  %v971_v7 = vld [vmem:[#allocation5 + $0x88] sm:$0xff]   ;;  %v974_v10 = vld [vmem:[#allocation5 + $0x10] sm:$0xff]   ;;  %v189_v29 = vunpack.c.0.s8 %v188_v23 }
  0x2a   :  { %893 = vmatpush3.bf16.msra.mxu1 %v967_v3  ;;  %872 = vmatprep.subr.bf16.mxu0 %v968_v4  ;;  %v975_v11 = vld [vmem:[#allocation5 + $0x90] sm:$0xff]   ;;  %v976_v12 = vld [vmem:[#allocation5 + $0x58] sm:$0xff]   ;;  %v980_v16 = vld [vmem:[#allocation5 + $0x60] sm:$0xff]  }
  0x2b   :  { %894 = vmatprep.subr.bf16.mxu1 %v969_v5  ;;  %v977_v13 = vld [vmem:[#allocation5 + $0xd8] sm:$0xff]   ;;  %v981_v17 = vld [vmem:[#allocation5 + $0xe0] sm:$0xff]   ;;  %v984_v20 = vld [vmem:[#allocation5 + $0x68] sm:$0xff]   ;;  %v1158_v35 = vsub.s32 %v189_v29, %v191_v30 }
  0x2c   :  { %v978_v14 = vld [vmem:[#allocation5 + $0x18] sm:$0xff]   ;;  %v982_v18 = vld [vmem:[#allocation5 + $0x20] sm:$0xff]   ;;  %v985_v21 = vld [vmem:[#allocation5 + $0xe8] sm:$0xff]  }
  0x2d   :  { %873 = vmatpush3.bf16.msra.mxu0 %v970_v6  ;;  %v979_v15 = vld [vmem:[#allocation5 + $0x98] sm:$0xff]   ;;  %v983_v19 = vld [vmem:[#allocation5 + $0xa0] sm:$0xff]   ;;  %v986_v25 = vld [vmem:[#allocation5 + $0x28] sm:$0xff]  }
  0x2e   :  { %895 = vmatpush3.bf16.msra.mxu1 %v971_v7  ;;  %874 = vmatprep.subr.bf16.mxu0 %v972_v8  ;;  %v987_v26 = vld [vmem:[#allocation5 + $0xa8] sm:$0xff]   ;;  %v988_v27 = vld [vmem:[#allocation5 + $0x70] sm:$0xff]   ;;  %v992_v33 = vld [vmem:[#allocation5 + $0x78] sm:$0xff]  }
  0x2f   :  { %896 = vmatprep.subr.bf16.mxu1 %v973_v9  ;;  %v989_v28 = vld [vmem:[#allocation5 + $0xf0] sm:$0xff]   ;;  %v993_v34 = vld [vmem:[#allocation5 + $0xf8] sm:$0xff]   ;;  %v997_v41 = vld [vmem:[#allocation5 + $0x140] sm:$0xff]  }
  0x30   :  { %v990_v31 = vld [vmem:[#allocation5 + $0x30] sm:$0xff]   ;;  %v994_v36 = vld [vmem:[#allocation5 + $0x38] sm:$0xff]   ;;  %v998_v42 = vld [vmem:[#allocation5 + $0x1c0] sm:$0xff]  }
  0x31   :  { %875 = vmatpush3.bf16.msra.mxu0 %v974_v10  ;;  %v991_v32 = vld [vmem:[#allocation5 + $0xb0] sm:$0xff]   ;;  %v995_v37 = vld [vmem:[#allocation5 + $0xb8] sm:$0xff]   ;;  %v999_v47 = vld [vmem:[#allocation5 + $0x100] sm:$0xff]  }
  0x32   :  { %897 = vmatpush3.bf16.msra.mxu1 %v975_v11  ;;  %876 = vmatprep.subr.bf16.mxu0 %v976_v12  ;;  %v56_v38 = vld [vmem:[#allocation2] sm:$0xff]  ;;  %v1001_v50 = vld [vmem:[#allocation5 + $0x148] sm:$0xff]   ;;  %v1000_v52 = vld [vmem:[#allocation5 + $0x180] sm:$0xff]  }
  0x33   :  { %898 = vmatprep.subr.bf16.mxu1 %v977_v13  ;;  %v186_v39 = vcombine.high %v56_v38, %v56_v38  ;;  %v193_v40 = vrot.slane %v56_v38, %v1158_v35  ;;  %v1002_v54 = vld [vmem:[#allocation5 + $0x1c8] sm:$0xff]   ;;  %v1005_v57 = vld [vmem:[#allocation5 + $0x150] sm:$0xff]   ;;  %v1009_v61 = vld [vmem:[#allocation5 + $0x158] sm:$0xff]  }
  0x34   :  { %v1003_v55 = vld [vmem:[#allocation5 + $0x108] sm:$0xff]   ;;  %v1006_v59 = vld [vmem:[#allocation5 + $0x1d0] sm:$0xff]   ;;  %v1010_v63 = vld [vmem:[#allocation5 + $0x1d8] sm:$0xff]  }
  0x35   :  { %877 = vmatpush3.bf16.msra.mxu0 %v978_v14  ;;  %v201_v43 = vcombine.high %v193_v40, %v193_v40  ;;  %v209_v44 = vrot.slane %v193_v40, %v1158_v35  ;;  %v1163_v45 = vrot.slane %v186_v39, %v1158_v35  ;;  %v1004_v58 = vld [vmem:[#allocation5 + $0x188] sm:$0xff]   ;;  %v1007_v60 = vld [vmem:[#allocation5 + $0x110] sm:$0xff]   ;;  %v1011_v0 = vld [vmem:[#allocation5 + $0x118] sm:$0xff]  }
  0x36   :  { %899 = vmatpush3.bf16.msra.mxu1 %v979_v15  ;;  %878 = vmatprep.subr.bf16.mxu0 %v980_v16  ;;  %v1008_v62 = vld [vmem:[#allocation5 + $0x190] sm:$0xff]   ;;  %v1013_v1 = vld [vmem:[#allocation5 + $0x160] sm:$0xff]   ;;  %v1012_v2 = vld [vmem:[#allocation5 + $0x198] sm:$0xff]  }
  0x37   :  { %900 = vmatprep.subr.bf16.mxu1 %v981_v17  ;;  %v223_v46 = vrot.slane %v201_v43, %v1158_v35  ;;  %v202_v48 = vcombine.high %v1163_v45, %v1163_v45  ;;  %v231_v49 = vcombine.high %v209_v44, %v209_v44  ;;  %v1014_v3 = vld [vmem:[#allocation5 + $0x1e0] sm:$0xff]   ;;  %v1017_v5 = vld [vmem:[#allocation5 + $0x168] sm:$0xff]   ;;  %v1021_v9 = vld [vmem:[#allocation5 + $0x170] sm:$0xff]   ;;  %v216_v17 = vrot.slane %v1163_v45, %v1158_v35 }
  0x38   :  { %v1015_v4 = vld [vmem:[#allocation5 + $0x120] sm:$0xff]   ;;  %v1018_v7 = vld [vmem:[#allocation5 + $0x1e8] sm:$0xff]   ;;  %v1022_v11 = vld [vmem:[#allocation5 + $0x1f0] sm:$0xff]  }
  0x39   :  { %879 = vmatpush3.bf16.msra.mxu0 %v982_v18  ;;  %659 = vmatprep.mubr.bf16.mxu0 %v223_v46  ;;  %v233_v51 = vcombine.high %v223_v46, %v223_v46  ;;  %v230_v53 = vrot.slane %v202_v48, %v1158_v35  ;;  %v1016_v6 = vld [vmem:[#allocation5 + $0x1a0] sm:$0xff]   ;;  %v1019_v8 = vld [vmem:[#allocation5 + $0x128] sm:$0xff]   ;;  %v1023_v12 = vld [vmem:[#allocation5 + $0x130] sm:$0xff]  }
  0x3a   :  { %901 = vmatpush3.bf16.msra.mxu1 %v983_v19  ;;  %880 = vmatprep.subr.bf16.mxu0 %v984_v20  ;;  %v1020_v10 = vld [vmem:[#allocation5 + $0x1a8] sm:$0xff]   ;;  %v1025_v13 = vld [vmem:[#allocation5 + $0x178] sm:$0xff]   ;;  %v1024_v14 = vld [vmem:[#allocation5 + $0x1b0] sm:$0xff]   ;;  %v232_v19 = vcombine.high %v216_v17, %v216_v17 }
  0x3b   :  { %902 = vmatprep.subr.bf16.mxu1 %v985_v21  ;;  %699 = vmatprep.mubr.bf16.mxu1 %v233_v51  ;;  %v234_v56 = vcombine.high %v230_v53, %v230_v53  ;;  %v1026_v15 = vld [vmem:[#allocation5 + $0x1f8] sm:$0xff]  }
  0x3c   :  { %v1027_v16 = vld [vmem:[#allocation5 + $0x138] sm:$0xff]  }
  0x3d   :  { %881 = vmatpush3.bf16.msra.mxu0 %v986_v25  ;;  %v1028_v18 = vld [vmem:[#allocation5 + $0x1b8] sm:$0xff]  }
  0x3e   :  { %903 = vmatpush3.bf16.msra.mxu1 %v987_v26  ;;  %882 = vmatprep.subr.bf16.mxu0 %v988_v27  ;;  %v805_v20 = vld [vmem:[%s1188_s2] ss:$0 sm:$0xff]  ;;  %s1106_s2 = smov [#allocation7]  }
  0x3f   :  { %904 = vmatprep.subr.bf16.mxu1 %v989_v28  ;;  %54 = vst [vmem:[#allocation7] sm:$0x3] %v805_v20  ;;  %s795_s11 = sshll.u32 %s1106_s2, 4  ;;  %s796_s11 = int_to_ptr.vmem [resolvable:$true] %s795_s11 }
  0x40   :  { %s1073_s12 = scalar_lea.vmem %s796_s11, 32  ;;  %p1078_p3 = scmp.lt.s32.totalorder %s796_s11, %s796_s11 }
  0x41   :  { %883 = vmatpush3.bf16.msra.mxu0 %v990_v31  ;;  %p1074_p2 = scmp.ne.s32.totalorder %s796_s11, %s1073_s12  ;;  %p1079_p4 = scmp.lt.s32.totalorder %s1073_s12, %s1073_s12 }
  0x42   :  { %905 = vmatpush3.bf16.msra.mxu1 %v991_v32  ;;  %884 = vmatprep.subr.bf16.mxu0 %v992_v33 }
  0x43   :  { %906 = vmatprep.subr.bf16.mxu1 %v993_v34  ;;  %p1080_p5 = por %p1079_p4, %p1078_p3 }
  0x45   :  { %885 = vmatpush3.bf16.msra.mxu0 %v994_v36  ;;  %p1081_p6 = pnand %p1080_p5, %p1074_p2 }
  0x46   :  { %907 = vmatpush3.bf16.msra.mxu1 %v995_v37  ;;  %914 = vmatprep.subr.bf16.mxu0 %v997_v41 }
  0x47   :  { %936 = vmatprep.subr.bf16.mxu1 %v998_v42  ;;  %v55_v42 = vld [vmem:[#allocation7] sm:$0x3] }
  0x48   :  { %660 = vmatmul.mubr.bf16.vlgmr.msra.gmra.mrb[0].mxu0 %v209_v44 }
  0x49   :  { %915 = vmatpush3.bf16.msra.mxu0 %v999_v47  ;;  %700 = vmatmul.mubr.bf16.vlgmr.msra.gmra.mrb[0].mxu1 %v231_v49 }
  0x4a   :  { %916 = vmatprep.subr.bf16.mxu0 %v1001_v50  ;;  %937 = vmatpush3.bf16.msra.mxu1 %v1000_v52 }
  0x4b   :  { %739 = vmatprep.mubr.bf16.mxu0 %v230_v53  ;;  %938 = vmatprep.subr.bf16.mxu1 %v1002_v54 }
  0x4c   :  { %779 = vmatprep.mubr.bf16.mxu1 %v234_v56 }
  0x4d   :  { %917 = vmatpush3.bf16.msra.mxu0 %v1003_v55 }
  0x4e   :  { %918 = vmatprep.subr.bf16.mxu0 %v1005_v57  ;;  %939 = vmatpush3.bf16.msra.mxu1 %v1004_v58 }
  0x4f   :  { %940 = vmatprep.subr.bf16.mxu1 %v1006_v59 }
  0x51   :  { %919 = vmatpush3.bf16.msra.mxu0 %v1007_v60 }
  0x52   :  { %920 = vmatprep.subr.bf16.mxu0 %v1009_v61  ;;  %941 = vmatpush3.bf16.msra.mxu1 %v1008_v62 }
  0x53   :  { %942 = vmatprep.subr.bf16.mxu1 %v1010_v63 }
  0x55   :  { %921 = vmatpush3.bf16.msra.mxu0 %v1011_v0 }
  0x56   :  { %922 = vmatprep.subr.bf16.mxu0 %v1013_v1  ;;  %943 = vmatpush3.bf16.msra.mxu1 %v1012_v2 }
  0x57   :  { %944 = vmatprep.subr.bf16.mxu1 %v1014_v3 }
  0x59   :  { %923 = vmatpush3.bf16.msra.mxu0 %v1015_v4 }
  0x5a   :  { %924 = vmatprep.subr.bf16.mxu0 %v1017_v5  ;;  %945 = vmatpush3.bf16.msra.mxu1 %v1016_v6 }
  0x5b   :  { %946 = vmatprep.subr.bf16.mxu1 %v1018_v7 }
  0x5d   :  { %925 = vmatpush3.bf16.msra.mxu0 %v1019_v8 }
  0x5e   :  { %926 = vmatprep.subr.bf16.mxu0 %v1021_v9  ;;  %947 = vmatpush3.bf16.msra.mxu1 %v1020_v10 }
  0x5f   :  { %948 = vmatprep.subr.bf16.mxu1 %v1022_v11 }
  0x61   :  { %927 = vmatpush3.bf16.msra.mxu0 %v1023_v12 }
  0x62   :  { %928 = vmatprep.subr.bf16.mxu0 %v1025_v13  ;;  %949 = vmatpush3.bf16.msra.mxu1 %v1024_v14 }
  0x63   :  { %950 = vmatprep.subr.bf16.mxu1 %v1026_v15 }
  0x65   :  { %929 = vmatpush3.bf16.msra.mxu0 %v1027_v16 }
  0x66   :  { %951 = vmatpush3.bf16.msra.mxu1 %v1028_v18 }
  0x68   :  { %740 = vmatmul.mubr.bf16.vlgmr.msra.gmra.mrb[4].mxu0 %v216_v17 }
  0x69   :  { %780 = vmatmul.mubr.bf16.vlgmr.msra.gmra.mrb[4].mxu1 %v232_v19 }
 0x11b   :  { %v886_v21 = vpop.f32.mrb[0].mxu0 }
 0x11c   :  { %v887_v22 = vpop.f32.mrb[1].mxu0  ;;  %v908_v23 = vpop.f32.mrb[0].mxu1 }
 0x11d   :  { %v888_v24 = vadd.f32 %v887_v22, %v886_v21  ;;  %v889_v25 = vpop.f32.mrb[2].mxu0  ;;  %v909_v26 = vpop.f32.mrb[1].mxu1 }
 0x11e   :  { %v890_v27 = vpop.f32.mrb[3].mxu0  ;;  %v910_v28 = vadd.f32 %v909_v26, %v908_v23  ;;  %v911_v29 = vpop.f32.mrb[2].mxu1 }
 0x11f   :  { %v912_v30 = vpop.f32.mrb[3].mxu1 }
 0x120   :  { %v702_v31 = vadd.f32 %v910_v28, %v888_v24 }
 0x13b   :  { %v930_v32 = vpop.f32.mrb[4].mxu0 }
 0x13c   :  { %v931_v33 = vpop.f32.mrb[5].mxu0  ;;  %v952_v34 = vpop.f32.mrb[4].mxu1 }
 0x13d   :  { %v932_v35 = vadd.f32 %v931_v33, %v930_v32  ;;  %v933_v36 = vpop.f32.mrb[6].mxu0  ;;  %v953_v37 = vpop.f32.mrb[5].mxu1 }
 0x13e   :  { %v934_v38 = vpop.f32.mrb[7].mxu0  ;;  %v954_v40 = vadd.f32 %v953_v37, %v952_v34  ;;  %v955_v41 = vpop.f32.mrb[6].mxu1 }
 0x13f   :  { %v742_v39 = vadd.f32 %v932_v35, %v702_v31  ;;  %v956_v43 = vpop.f32.mrb[7].mxu1 }
 0x141   :  { %v782_v44 = vadd.f32 %v954_v40, %v742_v39 }
 0x143   :  { %v787_v45 = vadd.f32 %v782_v44, %v55_v42 }
 0x145   :  { %788 = vst [vmem:[#allocation7] sm:$0x3] %v787_v45 }
 0x146   :  { %1084 = shalt.err (!%p1081_p6)
}
 0x147   :  { %s1085_s15 = scalar_lea.hbm %s1189_s3, 32 }
 0x148   :  { %p1086_p7 = scmp.ne.s32.totalorder %s1189_s3, %s1085_s15  ;;  %p1089_p8 = scmp.lt.u32.totalorder %s1085_s15, %s1189_s3 }
 0x14a   :  { %p1091_p9 = pnand %p1089_p8, %p1086_p7 }
 0x14c   :  { %1094 = shalt.err (!%p1091_p9)
}
 0x14d   :  { %798 = dma.vmem_to_hbm [thread:$0]  %s796_s11, 32, %s1189_s3, [#allocation4]  }
 0x14e   :  { %1099 = dma.done.wait [#allocation4], 32  }
 0x14f   :  { %1100 = vsyncadd [#allocation4], 4294967264 }
 0x150   :  { %802 = vsyncpa [#allocation3], 1 }
 0x151   :  { %803 = vsyncpa [#allocation6], 1 }
 0x152   :  { %804 = vsyncpa [#allocation4], 1 }

</bundles_post_ra>
